<compile_context>
chip_gen: v5e
topology: v5e:2x2
jax: 0.10.0
libtpu: 0.0.40
codegen_flags: <defaults>
</compile_context>

<pallas_src>
import functools

import numpy as np

import jax
import jax.numpy as jnp
from jax.experimental import pallas as pl
from jax.experimental.pallas import tpu as pltpu

F32 = jnp.float32
BF16 = jnp.bfloat16


# ----------------------------------------------------------------------------
# Fused embedding kernel (per row block of N = B*S tokens)
#   inputs : word-emb rows (rb, wd), lane-dense char rows (rb, W*C),
#            pre-reduced ctx rows (rb, cxd)            [blocked over N, bf16]
#            Toeplitz conv weight, conv bias, fused highway weight/bias
#                                                      [full, VMEM-resident]
#   output : highway(concat(word, charconv_maxpool, ctx_sum))   (rb, E) f32
# ----------------------------------------------------------------------------
def _embedding_kernel(
    we_ref,      # (rb, word_dim)            bf16
    ch_ref,      # (rb, W * char_dim)        bf16 (lane-dense char block)
    ctx_ref,     # (rb, ctx_dim)             bf16 (pre-reduced ctx sum)
    tw_ref,      # (W*char_dim, W*char_dim)  bf16 block-Toeplitz conv weight
    cb_ref,      # (1, char_dim)             f32
    hww_ref,     # (E, 2E)                   bf16 fused highway weight [H | T]
    hwb_ref,     # (1, 2E)                   f32  fused highway bias   [H | T]
    o_ref,       # (rb, E)                   f32
    *,
    word_len,
    char_dim,
):
    f32 = jnp.float32

    # --- char Conv1d("same") as ONE block-Toeplitz matmul ---------------------
    # Zero padding is folded into tw; contraction depth = W*C.
    conv = jnp.dot(ch_ref[...], tw_ref[...], preferred_element_type=f32)  # (rb, W*C)

    # Max-pool over positions via a short chain of lane-slice maximums;
    # conv bias added after the pool (exactly equivalent, saves a WxC add).
    cmax = conv[:, :char_dim]
    for w in range(1, word_len):
        cmax = jnp.maximum(cmax, conv[:, w * char_dim:(w + 1) * char_dim])
    char_feat = cmax + cb_ref[...]                                        # (rb, C)

    # --- concat word | char | ctx ---------------------------------------------
    emb = jnp.concatenate(
        [we_ref[...].astype(f32), char_feat, ctx_ref[...].astype(f32)], axis=-1
    )                                                                     # (rb, E)

    # --- highway: H and T fused into one (E, 2E) matmul -> 128-lane result ----
    z = (jnp.dot(emb.astype(BF16), hww_ref[...], preferred_element_type=f32)
         + hwb_ref[...])                                                  # (rb, 2E)
    e = emb.shape[-1]
    h = jnp.maximum(z[:, :e], 0.0)
    t = jax.nn.sigmoid(z[:, e:])

    # TODO(synk): pack two tokens per 128-lane output row (or pad E -> 128) for
    #             a fully lane-dense store; E = 64 currently stores via masked vst.
    o_ref[...] = h * t + emb * (1.0 - t)


# ----------------------------------------------------------------------------
# One-time parameter preparation (Toeplitz conv weight, fused highway weight,
# bf16 casts).  Done once, outside the per-call path.
# ----------------------------------------------------------------------------
def prepare_params(p, word_len):
    k = p["char_conv_k"]
    pad_l = (k - 1) // 2

    cw = np.asarray(p["char_conv_w"], dtype=np.float32)        # (k, C_in, C_out)
    c_in, c_out = cw.shape[1], cw.shape[2]

    # Block-Toeplitz expansion of the Conv1d("same") weight with the zero
    # padding baked in:  out[:, w*C+o] = sum_{p,c} x[:, p*C+c] * T[p*C+c, w*C+o]
    toep = np.zeros((word_len * c_in, word_len * c_out), dtype=np.float32)
    for w in range(word_len):
        for pos in range(word_len):
            j = pos - w + pad_l
            if 0 <= j < k:
                toep[pos * c_in:(pos + 1) * c_in, w * c_out:(w + 1) * c_out] = cw[j]

    hw_w = jnp.concatenate([p["hw_wh"], p["hw_wt"]], axis=1)   # (E, 2E)
    hw_b = jnp.concatenate([p["hw_bh"], p["hw_bt"]], axis=1)   # (1, 2E)

    return {
        "word_emb": p["word_emb"].astype(BF16),
        "char_emb": p["char_emb"].astype(BF16),
        "ctx_w": p["ctx_w"].astype(F32),
        "conv_toeplitz": jnp.asarray(toep, dtype=BF16),
        "conv_b": p["char_conv_b"].astype(F32),
        "hw_w": hw_w.astype(BF16),
        "hw_b": hw_b.astype(F32),
    }


# ----------------------------------------------------------------------------
# Forward pass wrapper
# ----------------------------------------------------------------------------
def embedding_forward(kp, x_word, x_char, x_ctx, *, row_block=1024):
    """Forward pass of the Embedding module. Returns (B, S, emb_dim) f32."""
    B, S = x_word.shape
    W = x_char.shape[2]
    n_ctx, ctx_dim = x_ctx.shape[2], x_ctx.shape[3]
    N = B * S

    word_dim = kp["word_emb"].shape[1]
    char_dim = kp["char_emb"].shape[1]
    E = word_dim + char_dim + ctx_dim
    wc = W * char_dim

    # Embedding gathers + ctx pre-reduction stay in XLA (tiny tables,
    # data-dependent gathers); everything downstream is one fused kernel.
    we = jnp.take(kp["word_emb"], x_word.reshape(N), axis=0)               # (N, wd)
    ch = jnp.take(kp["char_emb"], x_char.reshape(N * W), axis=0)           # (N*W, cd)
    ch = ch.reshape(N, wc)                                                 # (N, W*C)
    ctx = jnp.sum(x_ctx.reshape(N, n_ctx, ctx_dim) * kp["ctx_w"][None, :, :],
                  axis=1).astype(BF16)                                     # (N, cxd)

    # Row-block selection: big blocks amortize per-step overhead; keep >=4 grid
    # steps when N allows (v7x megacore sharding + DMA/compute pipelining).
    rb = max(8, (row_block // 8) * 8)
    if N <= rb:
        rb = max(8, ((N + 7) // 8) * 8)          # single block for tiny N
    else:
        rb = min(rb, max(8, (pl.cdiv(N, 4) // 8) * 8))
    grid_n = pl.cdiv(N, rb)
    n_pad = grid_n * rb
    if n_pad != N:
        pad = ((0, n_pad - N), (0, 0))
        we = jnp.pad(we, pad)
        ch = jnp.pad(ch, pad)
        ctx = jnp.pad(ctx, pad)

    kern = functools.partial(_embedding_kernel, word_len=W, char_dim=char_dim)
    out = pl.pallas_call(
        kern,
        out_shape=jax.ShapeDtypeStruct((n_pad, E), F32),
        grid=(grid_n,),
        in_specs=[
            pl.BlockSpec((rb, word_dim), lambda i: (i, 0)),
            pl.BlockSpec((rb, wc), lambda i: (i, 0)),
            pl.BlockSpec((rb, ctx_dim), lambda i: (i, 0)),
            pl.BlockSpec(kp["conv_toeplitz"].shape, lambda i: (0, 0)),
            pl.BlockSpec(kp["conv_b"].shape, lambda i: (0, 0)),
            pl.BlockSpec(kp["hw_w"].shape, lambda i: (0, 0)),
            pl.BlockSpec(kp["hw_b"].shape, lambda i: (0, 0)),
        ],
        out_specs=pl.BlockSpec((rb, E), lambda i: (i, 0)),
        compiler_params=pltpu.CompilerParams(
            dimension_semantics=("parallel",),
            vmem_limit_bytes=32 * 1024 * 1024,
        ),
    )(we, ch, ctx, kp["conv_toeplitz"], kp["conv_b"], kp["hw_w"], kp["hw_b"])

    return out[:N].reshape(B, S, E)


# ----------------------------------------------------------------------------
# Pure-JAX reference (for correctness check), full-precision f32 matmuls.
# ----------------------------------------------------------------------------
def reference_forward(p, x_word, x_char, x_ctx):
    B, S = x_word.shape
    W = x_char.shape[2]
    k = p["char_conv_k"]
    pad_l, pad_r = (k - 1) // 2, k // 2
    hi = jax.lax.Precision.HIGHEST

    we = jnp.take(p["word_emb"], x_word, axis=0)                        # (B,S,wd)
    ce = jnp.take(p["char_emb"], x_char, axis=0)                        # (B,S,W,cd)
    cd = ce.shape[-1]
    cep = jnp.pad(ce.reshape(B * S, W, cd), ((0, 0), (pad_l, pad_r), (0, 0)))
    conv = sum(
        jnp.einsum("nlc,co->nlo", cep[:, j:j + W, :], p["char_conv_w"][j],
                   precision=hi)
        for j in range(k)
    ) + p["char_conv_b"]
    char_feat = jnp.max(conv, axis=1).reshape(B, S, cd)
    ctx = (x_ctx * p["ctx_w"][None, None]).sum(axis=2)
    emb = jnp.concatenate([we, char_feat, ctx], axis=-1)
    E = emb.shape[-1]
    x2 = emb.reshape(B * S, E)
    h = jax.nn.relu(jnp.dot(x2, p["hw_wh"], precision=hi) + p["hw_bh"])
    t = jax.nn.sigmoid(jnp.dot(x2, p["hw_wt"], precision=hi) + p["hw_bt"])
    out = h * t + x2 * (1.0 - t)
    return out.reshape(B, S, E)


# ----------------------------------------------------------------------------
# Deterministic parameter construction
# ----------------------------------------------------------------------------
def build_params():
    keys = iter(jax.random.split(jax.random.PRNGKey(0), 16))

    def nrm(shape, scale=0.1):
        return jax.random.normal(next(keys), shape, dtype=F32) * scale

    word_vocab, word_dim = 50, 32
    char_vocab, char_dim = 30, 16
    n_ctx, ctx_dim = 2, 16
    k = 3
    emb_dim = word_dim + char_dim + ctx_dim  # 64

    return {
        "word_emb": nrm((word_vocab, word_dim), 1.0),
        "char_emb": nrm((char_vocab, char_dim), 1.0),
        "ctx_w": jnp.full((n_ctx, 1), 1.0 / n_ctx, dtype=F32),
        "char_conv_k": k,
        "char_conv_w": nrm((k, char_dim, char_dim)),   # (k, C_in, C_out)
        "char_conv_b": nrm((1, char_dim)),
        "hw_wh": nrm((emb_dim, emb_dim)),
        "hw_bh": nrm((1, emb_dim)),
        "hw_wt": nrm((emb_dim, emb_dim)),
        "hw_bt": nrm((1, emb_dim)),
    }


if __name__ == "__main__":
    B, S, W = 2, 8, 6
    params = build_params()
    kparams = prepare_params(params, word_len=W)

    ikeys = jax.random.split(jax.random.PRNGKey(1), 3)
    x_word = jax.random.randint(ikeys[0], (B, S), 0, 50, dtype=jnp.int32)
    x_char = jax.random.randint(ikeys[1], (B, S, W), 0, 30, dtype=jnp.int32)
    x_ctx = jax.random.normal(ikeys[2], (B, S, 2, 16), dtype=F32)

    # row_block=8 -> grid=(2,) at this demo size so the pipelined grid is exercised.
    out = embedding_forward(kparams, x_word, x_char, x_ctx, row_block=8)
    out = jax.block_until_ready(out)

    assert out.shape == (B, S, 64), out.shape
    assert bool(jnp.all(jnp.isfinite(out)))

    ref = reference_forward(params, x_word, x_char, x_ctx)
    max_err = float(jnp.max(jnp.abs(out - ref)))
    # bf16 inputs/weights (f32 accumulation) vs full-f32 reference: bf16-level tolerance.
    assert max_err < 6e-2, f"mismatch vs reference: {max_err}"

    print("KERNEL_OK")
</pallas_src>

<mosaic_0001>
module attributes {stable_mosaic.version = 11 : i64} {
  func.func @_embedding_kernel(%arg0: i32, %arg1: memref<8x32xbf16, #tpu.memory_space<vmem>>, %arg2: memref<8x96xbf16, #tpu.memory_space<vmem>>, %arg3: memref<8x16xbf16, #tpu.memory_space<vmem>>, %arg4: memref<96x96xbf16, #tpu.memory_space<vmem>>, %arg5: memref<1x16xf32, #tpu.memory_space<vmem>>, %arg6: memref<64x128xbf16, #tpu.memory_space<vmem>>, %arg7: memref<1x128xf32, #tpu.memory_space<vmem>>, %arg8: memref<8x64xf32, #tpu.memory_space<vmem>>) attributes {dimension_semantics = [#tpu.dimension_semantics<parallel>], iteration_bounds = array<i64: 2>, scalar_prefetch = 0 : i64, scratch_operands = 0 : i64, tpu.core_type = #tpu.core_type<tc>, window_params = [{transform_indices = @transform_0, window_bounds = array<i64: 8, 32>}, {transform_indices = @transform_1, window_bounds = array<i64: 8, 96>}, {transform_indices = @transform_2, window_bounds = array<i64: 8, 16>}, {pipeline_mode = #tpu.pipeline_mode<synchronous>, transform_indices = @transform_3, window_bounds = array<i64: 96, 96>}, {pipeline_mode = #tpu.pipeline_mode<synchronous>, transform_indices = @transform_4, window_bounds = array<i64: 1, 16>}, {pipeline_mode = #tpu.pipeline_mode<synchronous>, transform_indices = @transform_5, window_bounds = array<i64: 64, 128>}, {pipeline_mode = #tpu.pipeline_mode<synchronous>, transform_indices = @transform_6, window_bounds = array<i64: 1, 128>}, {transform_indices = @transform_7, window_bounds = array<i64: 8, 64>}]} {
    %c0 = arith.constant 0 : index
    %c0_0 = arith.constant 0 : index
    %0 = vector.load %arg2[%c0, %c0_0] : memref<8x96xbf16, #tpu.memory_space<vmem>>, vector<8x96xbf16>
    %c0_1 = arith.constant 0 : index
    %c0_2 = arith.constant 0 : index
    %1 = vector.load %arg4[%c0_1, %c0_2] : memref<96x96xbf16, #tpu.memory_space<vmem>>, vector<96x96xbf16>
    %cst = arith.constant dense<0.000000e+00> : vector<8x96xf32>
    %2 = tpu.matmul %0, %1, %cst {dimension_numbers = #tpu.dot_dimension_numbers<[1], [0], [0], [1], [0, 0, 1, 1], [], []>} : vector<8x96xbf16>, vector<96x96xbf16>, vector<8x96xf32> -> vector<8x96xf32>
    %3 = vector.extract_strided_slice %2 {offsets = [0, 0], sizes = [8, 16], strides = [1, 1]} : vector<8x96xf32> to vector<8x16xf32>
    %4 = vector.extract_strided_slice %2 {offsets = [0, 16], sizes = [8, 16], strides = [1, 1]} : vector<8x96xf32> to vector<8x16xf32>
    %5 = arith.maximumf %3, %4 : vector<8x16xf32>
    %6 = vector.extract_strided_slice %2 {offsets = [0, 32], sizes = [8, 16], strides = [1, 1]} : vector<8x96xf32> to vector<8x16xf32>
    %7 = arith.maximumf %5, %6 : vector<8x16xf32>
    %8 = vector.extract_strided_slice %2 {offsets = [0, 48], sizes = [8, 16], strides = [1, 1]} : vector<8x96xf32> to vector<8x16xf32>
    %9 = arith.maximumf %7, %8 : vector<8x16xf32>
    %10 = vector.extract_strided_slice %2 {offsets = [0, 64], sizes = [8, 16], strides = [1, 1]} : vector<8x96xf32> to vector<8x16xf32>
    %11 = arith.maximumf %9, %10 : vector<8x16xf32>
    %12 = vector.extract_strided_slice %2 {offsets = [0, 80], sizes = [8, 16], strides = [1, 1]} : vector<8x96xf32> to vector<8x16xf32>
    %13 = arith.maximumf %11, %12 : vector<8x16xf32>
    %c0_3 = arith.constant 0 : index
    %c0_4 = arith.constant 0 : index
    %14 = vector.load %arg5[%c0_3, %c0_4] : memref<1x16xf32, #tpu.memory_space<vmem>>, vector<1x16xf32>
    %15 = vector.broadcast %14 : vector<1x16xf32> to vector<8x16xf32>
    %16 = arith.addf %13, %15 : vector<8x16xf32>
    %c0_5 = arith.constant 0 : index
    %c0_6 = arith.constant 0 : index
    %17 = vector.load %arg1[%c0_5, %c0_6] : memref<8x32xbf16, #tpu.memory_space<vmem>>, vector<8x32xbf16>
    %18 = arith.extf %17 : vector<8x32xbf16> to vector<8x32xf32>
    %c0_7 = arith.constant 0 : index
    %c0_8 = arith.constant 0 : index
    %19 = vector.load %arg3[%c0_7, %c0_8] : memref<8x16xbf16, #tpu.memory_space<vmem>>, vector<8x16xbf16>
    %20 = arith.extf %19 : vector<8x16xbf16> to vector<8x16xf32>
    %21 = tpu.concatenate %18, %16, %20 in 1 : vector<8x32xf32>, vector<8x16xf32>, vector<8x16xf32> -> vector<8x64xf32>
    %22 = arith.truncf %21 : vector<8x64xf32> to vector<8x64xbf16>
    %c0_9 = arith.constant 0 : index
    %c0_10 = arith.constant 0 : index
    %23 = vector.load %arg6[%c0_9, %c0_10] : memref<64x128xbf16, #tpu.memory_space<vmem>>, vector<64x128xbf16>
    %cst_11 = arith.constant dense<0.000000e+00> : vector<8x128xf32>
    %24 = tpu.matmul %22, %23, %cst_11 {dimension_numbers = #tpu.dot_dimension_numbers<[1], [0], [0], [1], [0, 0, 1, 1], [], []>} : vector<8x64xbf16>, vector<64x128xbf16>, vector<8x128xf32> -> vector<8x128xf32>
    %c0_12 = arith.constant 0 : index
    %c0_13 = arith.constant 0 : index
    %25 = vector.load %arg7[%c0_12, %c0_13] : memref<1x128xf32, #tpu.memory_space<vmem>>, vector<1x128xf32>
    %26 = vector.broadcast %25 : vector<1x128xf32> to vector<8x128xf32>
    %27 = arith.addf %24, %26 : vector<8x128xf32>
    %28 = vector.extract_strided_slice %27 {offsets = [0, 0], sizes = [8, 64], strides = [1, 1]} : vector<8x128xf32> to vector<8x64xf32>
    %cst_14 = arith.constant 0.000000e+00 : f32
    %29 = vector.broadcast %cst_14 : f32 to vector<8x64xf32>
    %30 = arith.maximumf %28, %29 : vector<8x64xf32>
    %31 = vector.extract_strided_slice %27 {offsets = [0, 64], sizes = [8, 64], strides = [1, 1]} : vector<8x128xf32> to vector<8x64xf32>
    %32 = arith.negf %31 : vector<8x64xf32>
    %33 = math.exp %32 : vector<8x64xf32>
    %cst_15 = arith.constant 1.000000e+00 : f32
    %34 = vector.broadcast %cst_15 : f32 to vector<8x64xf32>
    %35 = arith.addf %34, %33 : vector<8x64xf32>
    %36 = arith.divf %34, %35 : vector<8x64xf32>
    %37 = arith.mulf %30, %36 : vector<8x64xf32>
    %cst_16 = arith.constant 1.000000e+00 : f32
    %38 = vector.broadcast %cst_16 : f32 to vector<8x64xf32>
    %39 = arith.subf %38, %36 : vector<8x64xf32>
    %40 = arith.mulf %21, %39 : vector<8x64xf32>
    %41 = arith.addf %37, %40 : vector<8x64xf32>
    %c0_17 = arith.constant 0 : index
    %c0_18 = arith.constant 0 : index
    %42 = vector.load %arg8[%c0_17, %c0_18] : memref<8x64xf32, #tpu.memory_space<vmem>>, vector<8x64xf32>
    tpu.vector_store %arg8[%c0_17, %c0_18], %41 {strides = array<i32>} : memref<8x64xf32, #tpu.memory_space<vmem>>, vector<8x64xf32>,
    return
  }
  func.func @transform_0(%arg0: i32) -> (i32, i32) {
    %c0_i32 = arith.constant 0 : i32
    %c0_i32_0 = arith.constant 0 : i32
    return %arg0, %c0_i32 : i32, i32
  }
  func.func @transform_1(%arg0: i32) -> (i32, i32) {
    %c0_i32 = arith.constant 0 : i32
    %c0_i32_0 = arith.constant 0 : i32
    return %arg0, %c0_i32 : i32, i32
  }
  func.func @transform_2(%arg0: i32) -> (i32, i32) {
    %c0_i32 = arith.constant 0 : i32
    %c0_i32_0 = arith.constant 0 : i32
    return %arg0, %c0_i32 : i32, i32
  }
  func.func @transform_3(%arg0: i32) -> (i32, i32) {
    %c0_i32 = arith.constant 0 : i32
    %c0_i32_0 = arith.constant 0 : i32
    %c0_i32_1 = arith.constant 0 : i32
    return %c0_i32, %c0_i32_0 : i32, i32
  }
  func.func @transform_4(%arg0: i32) -> (i32, i32) {
    %c0_i32 = arith.constant 0 : i32
    %c0_i32_0 = arith.constant 0 : i32
    %c0_i32_1 = arith.constant 0 : i32
    return %c0_i32, %c0_i32_0 : i32, i32
  }
  func.func @transform_5(%arg0: i32) -> (i32, i32) {
    %c0_i32 = arith.constant 0 : i32
    %c0_i32_0 = arith.constant 0 : i32
    %c0_i32_1 = arith.constant 0 : i32
    return %c0_i32, %c0_i32_0 : i32, i32
  }
  func.func @transform_6(%arg0: i32) -> (i32, i32) {
    %c0_i32 = arith.constant 0 : i32
    %c0_i32_0 = arith.constant 0 : i32
    %c0_i32_1 = arith.constant 0 : i32
    return %c0_i32, %c0_i32_0 : i32, i32
  }
  func.func @transform_7(%arg0: i32) -> (i32, i32) {
    %c0_i32 = arith.constant 0 : i32
    %c0_i32_0 = arith.constant 0 : i32
    return %arg0, %c0_i32 : i32, i32
  }
}

</mosaic_0001>

<bundles_post_ra>
// kernel: tpu_custom_call.1
= control target key start
LH: loop header
LB: loop body
LE: loop exit
PB: predicated region body
PF: predicated region fallthrough
CT: control target
= control target key end

     0   :  { %s1419_s0 = inlined_call_operand.hbm [shape: bf16[16,32], index: 0, kind: input, shape index: {}]   ;;  %s1420_s1 = inlined_call_operand.hbm [shape: bf16[16,96], index: 1, kind: input, shape index: {}]   ;;  %s1421_s2 = inlined_call_operand.hbm [shape: bf16[16,16], index: 2, kind: input, shape index: {}]   ;;  %s1422_s3 = inlined_call_operand.hbm [shape: bf16[96,96], index: 3, kind: input, shape index: {}]   ;;  %s1423_s4 = inlined_call_operand.vmem [shape: f32[1,16], index: 4, kind: input, shape index: {}]   ;;  %s1424_s5 = inlined_call_operand.hbm [shape: bf16[64,128], index: 5, kind: input, shape index: {}]   ;;  %s1425_s6 = inlined_call_operand.vmem [shape: f32[1,128], index: 6, kind: input, shape index: {}]   ;;  %s1426_s7 = inlined_call_operand.hbm [shape: f32[16,64], index: 7, kind: output, shape index: {}]  }
   0x1   :  { %1436 = sst [smem:[#allocation21_spill]] %s1420_s1 }
   0x2   :  { %1437 = sst [smem:[#allocation22_spill]] %s1422_s3 }
   0x3   :  { %12 = vsyncpa [#allocation3], 0 }
   0x4   :  { %14 = vsyncpa [#allocation3 + $0x1], 0 }
   0x5   :  { %15 = vsyncpa [#allocation6], 0 }
   0x6   :  { %17 = vsyncpa [#allocation6 + $0x1], 0 }
   0x7   :  { %18 = vsyncpa [#allocation9], 0 }
   0x8   :  { %19 = vsyncpa [#allocation4], 0 }
   0x9   :  { %21 = vsyncpa [#allocation4 + $0x1], 0  ;;  %s1190_s24 = smov 0   ;;  %s1192_s25 = smov 0  }
   0xa   :  { %s1194_s26 = smov 0   ;;  %s1196_s27 = smov 0  }
   0xb LB: > { %1438 = sst [smem:[#allocation16_spill]] %s1126_s24  ;;  %s1214_s8 = sadd.s32 4294967295, %s1138_s27   ;;  %s1138_s27 = sphi %s1196_s27, %s1460_s27   ;;  %s1134_s26 = sphi %s1194_s26, %s1464_s26   ;;  %s1130_s25 = sphi %s1192_s25, %s1463_s25   ;;  %s1126_s24 = sphi %s1190_s24, %s1462_s24  }
   0xc   : > { %1439 = sst [smem:[#allocation17_spill]] %s1138_s27  ;;  %p749_p0 = scmp.ge.s32.totalorder %s1138_s27, 1 }
   0xd   : > { %s1440_s3 = sld [smem:[#allocation22_spill]]  ;;  %p1435_p1 = scmp.eq.s32.totalorder %s1214_s8, 0 }
   0xe   : > { %p220_p2 = scmp.lt.s32.totalorder %s1138_s27, 3  ;;  %s1140_s10 = smov [#allocation8]  }
   0xf   : > { %s233_s11 = sshll.u32 %s1140_s10, 4  ;;  %s1427_s13 = smov 64   ;;  %s234_s11 = int_to_ptr.vmem [resolvable:$true] %s233_s11 }
  0x10   : > { %p1219_p3 = pnand %p749_p0, %p220_p2  ;;  %s1428_s14 = smov 4  }
  0x11   : > { %s748_s15 = sadd.s32 4294967294, %s1138_s27   ;;  %s1239_s16 = sadd.s32 1, %s1138_s27  }
  0x12   : > { %p839_p4 = pneg %p1219_p3  ;;  %1443 = sst [smem:[#allocation18_spill]] %s1239_s16 }
  0x13   : > { %s231_s30 = sshll.u32 %s1440_s3, 4  ;;  %s34_s17 = sadd.s32 1, %s1134_s26  ;;  %s232_s30 = int_to_ptr.hbm [resolvable:$true] %s231_s30 }
  0x14   : > { %p1228_p6 = pnand %p839_p4, %p1435_p1  ;;  %s31_s18 = ssub.s32 %s1138_s27, %s1239_s16 }
  0x15   : > { %p41_p7 = scmp.ne.s32.totalorder %s1134_s26, %s1130_s25  ;;  %p32_p8 = scmp.eq.s32.totalorder %s31_s18, 0 }
  0x16   : > { %842 = dma.hbm_to_vmem [thread:$0]  (!%p1228_p6), %s232_s30, 768, %s234_s11, [#allocation9], %s1427_s13, %s1427_s13, %s1428_s14  }
  0x17   : > { %p42_p9 = scmp.eq.s32.totalorder %s1138_s27, 0  ;;  %p47_p10 = scmp.ne.s32.totalorder %s1130_s25, %s1126_s24 }
  0x18   : > { %p207_p11 = scmp.eq.s32.totalorder %s1214_s8, 1  ;;  %p213_p2 = scmp.eq.s32.totalorder %s748_s15, 1 }
  0x19   : > { %s1251_s19 = scalar_select %p32_p8, %s1134_s26, %s34_s17  }
  0x1a   : > { %p43_p12 = por %p42_p9, %p41_p7  ;;  %p1255_p13 = por %p1435_p1, %p47_p10 }
  0x1b   : > { %1444 = sst [smem:[#allocation19_spill]] %s1251_s19  ;;  %p1259_p0 = por %p207_p11, %p41_p7 }
  0x1c   : > { %p862_p4 = scmp.lt.s32.totalorder %s1138_s27, 2  ;;  %s1429_s22 = sand.u32 1, %s1134_s26  }
  0x1d   : > { %p1265_p5 = por %p213_p2, %p47_p10  ;;  %s1271_s28 = sshll.u32 %s1429_s22, 2 }
  0x1e   : > { %s1274_s29 = sshll.u32 %s1138_s27, 2  ;;  %p1276_p8 = pnand %p862_p4, %p43_p12 }
  0x1f   : > { %s1447_s23 = scalar_select %p1265_p5, 1, 0 }
  0x20   : > { %s286_s10 = sand.u32 1, %s1138_s27   ;;  %s1450_s1 = sld [smem:[#allocation21_spill]] }
  0x21   : > { %1448 = sst [smem:[#allocation20_spill]] %s1447_s23  ;;  %s290_s18 = scalar_lea.vmem [#allocation5], %s1271_s28 }
  0x22   : > { %s298_s13 = sshll.u32 %s290_s18, 4  ;;  %s248_s19 = sshll.u32 %s1424_s5, 4  ;;  %s299_s13 = int_to_ptr.vmem [resolvable:$true] %s298_s13  ;;  %s249_s19 = int_to_ptr.hbm [resolvable:$true] %s248_s19 }
  0x23   : > { %s1289_s16 = scalar_lea.sflag [#allocation6], %s286_s10  ;;  %p948_p9 = pneg %p1276_p8 }
  0x26   : > { %s294_s17 = scalar_lea.hbm %s1450_s1, %s1274_s29 }
  0x27   : > { %s296_s14 = sshll.u32 %s294_s17, 4  ;;  %s951_s17 = scalar_lea.hbm %s1450_s1, 8  ;;  %s297_s14 = int_to_ptr.hbm [resolvable:$true] %s296_s14 }
  0x28   : > { %s944_s23 = sshra.s32 %s297_s14, 4  ;;  %s945_s23 = int_to_ptr.hbm [resolvable:$true] %s944_s23 }
  0x29   : > { %s946_s24 = scalar_lea.hbm %s945_s23, 4  ;;  %p952_p12 = scmp.lt.s32.totalorder %s945_s23, %s1450_s1 }
  0x2a   : > { %p947_p7 = scmp.ne.s32.totalorder %s945_s23, %s946_s24  ;;  %p953_p2 = scmp.lt.s32.totalorder %s951_s17, %s946_s24 }
  0x2c   : > { %p949_p10 = pnand %p948_p9, %p947_p7  ;;  %p954_p4 = por %p953_p2, %p952_p12 }
  0x2e   : > { %p950_p11 = pneg %p949_p10 }
  0x30   : > { %p955_p1 = pnand %p954_p4, %p950_p11 }
  0x32   : > { %958 = shalt.err (!%p955_p1)
}
  0x33   : > { %852 = dma.hbm_to_vmem [thread:$0]  (!%p1276_p8), %s297_s14, 64, %s299_s13, %s1289_s16  }
  0x34   : > { %s1143_s3 = smov [#allocation10]   ;;  %s1451_s27 = smov 4  }
  0x35   : > { %s250_s22 = sshll.u32 %s1143_s3, 4  ;;  %s1452_s23 = smov 64   ;;  %s251_s22 = int_to_ptr.vmem [resolvable:$true] %s250_s22 }
  0x36   : > { %845 = dma.hbm_to_vmem [thread:$0]  (!%p1228_p6), %s249_s19, 512, %s251_s22, [#allocation9], %s1452_s23, %s1452_s23, %s1451_s27  }
  0x37   : > { %s275_s11 = scalar_lea.hbm %s1419_s0, %s1274_s29  ;;  %s271_s15 = scalar_lea.vmem [#allocation2], %s1271_s28 }
  0x38   : > { %s279_s17 = sshll.u32 %s271_s15, 4  ;;  %s277_s18 = sshll.u32 %s275_s11, 4  ;;  %s280_s17 = int_to_ptr.vmem [resolvable:$true] %s279_s17  ;;  %s278_s18 = int_to_ptr.hbm [resolvable:$true] %s277_s18 }
  0x39   : > { %s1453_s13 = sand.u32 1, %s1134_s26   ;;  %s1004_s1 = sshra.s32 %s278_s18, 4  ;;  %s1005_s1 = int_to_ptr.hbm [resolvable:$true] %s1004_s1 }
  0x3a   : > { %s268_s14 = scalar_lea.sflag [#allocation3], %s1453_s13  ;;  %s1006_s3 = scalar_lea.hbm %s1005_s1, 4 }
  0x3b   : > { %p1007_p1 = scmp.ne.s32.totalorder %s1005_s1, %s1006_s3  ;;  %s1011_s22 = scalar_lea.hbm %s1419_s0, 8 }
  0x3c   : > { %p1012_p6 = scmp.lt.s32.totalorder %s1005_s1, %s1419_s0  ;;  %p1013_p11 = scmp.lt.s32.totalorder %s1011_s22, %s1006_s3 }
  0x3d   : > { %p1009_p7 = pnand %p1007_p1, %p948_p9 }
  0x3e   : > { %p1014_p12 = por %p1013_p11, %p1012_p6 }
  0x3f   : > { %p1010_p10 = pneg %p1009_p7 }
  0x41   : > { %p1015_p2 = pnand %p1014_p12, %p1010_p10 }
  0x43   : > { %1018 = shalt.err (!%p1015_p2)
}
  0x44   : > { %849 = dma.hbm_to_vmem [thread:$0]  (!%p1276_p8), %s278_s18, 64, %s280_s17, %s268_s14  }
  0x45   : > { %s313_s11 = scalar_lea.hbm %s1421_s2, %s1274_s29  ;;  %s309_s15 = scalar_lea.vmem [#allocation7], %s1271_s28 }
  0x46   : > { %s317_s13 = sshll.u32 %s309_s15, 4  ;;  %s315_s12 = sshll.u32 %s313_s11, 4  ;;  %s318_s13 = int_to_ptr.vmem [resolvable:$true] %s317_s13  ;;  %s316_s12 = int_to_ptr.hbm [resolvable:$true] %s315_s12 }
  0x47   : > { %s1034_s1 = sshra.s32 %s316_s12, 4  ;;  %s1041_s17 = scalar_lea.hbm %s1421_s2, 8  ;;  %s1035_s1 = int_to_ptr.hbm [resolvable:$true] %s1034_s1 }
  0x48   : > { %s1036_s3 = scalar_lea.hbm %s1035_s1, 4  ;;  %p1042_p10 = scmp.lt.s32.totalorder %s1035_s1, %s1421_s2 }
  0x49   : > { %p1037_p4 = scmp.ne.s32.totalorder %s1035_s1, %s1036_s3  ;;  %p1043_p6 = scmp.lt.s32.totalorder %s1041_s17, %s1036_s3 }
  0x4b   : > { %p1039_p1 = pnand %p1037_p4, %p948_p9  ;;  %p1044_p11 = por %p1043_p6, %p1042_p10 }
  0x4d   : > { %p1040_p7 = pneg %p1039_p1 }
  0x4f   : > { %p1045_p12 = pnand %p1044_p11, %p1040_p7 }
  0x51   : > { %1048 = shalt.err (!%p1045_p12)
}
  0x52   : > { %855 = dma.hbm_to_vmem [thread:$0]  (!%p1276_p8), %s316_s12, 64, %s318_s13, %s1289_s16  }
  0x53   : > { %326 = sbr.rel (%p1219_p3) target bundleno = 752 (0x2f0), region = 48  ;;  %s1348_s28 = sand.u32 (!%p1219_p3), 1, %s1130_s25  }
  0x54   : > { %s1351_s29 = sshll.u32 (!%p1219_p3), %s1348_s28, 2  ;;  %s329_s27 = scalar_lea.sflag (!%p1219_p3), [#allocation3], %s1348_s28 }
  0x55   : > { %s332_s23 = scalar_lea.vmem (!%p1219_p3), [#allocation2], %s1351_s29 }
  0x58   : > { %1109 = dma.done.wait (%p1255_p13), %s329_s27, 64  }
  0x59   : > { %1111 = vsyncadd (%p1255_p13), %s329_s27, 4294967232  ;;  %s338_s9 = sand.u32 1, %s1214_s8   ;;  %s342_s30 = scalar_lea.vmem [#allocation5], %s1351_s29 }
  0x5a   : > { %s339_s16 = scalar_lea.sflag [#allocation6], %s338_s9 }
  0x5b   : > { %1113 = dma.done.wait (%p1255_p13), %s339_s16, 128  }
  0x5c   : > { %1115 = vsyncadd (%p1255_p13), %s339_s16, 4294967168  ;;  %s352_s24 = scalar_lea.vmem [#allocation7], %s1351_s29  ;;  %p1454_p3 = scmp.eq.s32.totalorder %s1214_s8, 0 }
  0x5e   : > { %1117 = dma.done.wait (%p1454_p3), [#allocation9], 1280   ;;  %p1455_p8 = pmov %p1454_p3 }
  0x5f   : > { %v818_v0 = vld [vmem:[#allocation8 + $0x28] sm:$0xff]  ;;  %v817_v1 = vld [vmem:[#allocation8 + $0x20] sm:$0xff]  ;;  %v816_v2 = vld [vmem:[#allocation8 + $0x18] sm:$0xff]  ;;  %vm454_vm0 = vcmask 785408   ;;  %s1144_s20 = smov 48   ;;  %s1145_s10 = smov 80  }
  0x60   : > { %1119 = vsyncadd (%p1455_p8), [#allocation9], 4294966016  ;;  %460 = vmatpush.bf16.msra.mxu0 %v818_v0  ;;  %v815_v3 = vld [vmem:[#allocation8 + $0x10] sm:$0xff]  ;;  %v814_v4 = vld [vmem:[#allocation8 + $0x8] sm:$0xff]  ;;  %s1146_s11 = smov 112   ;;  %s1147_s15 = smov 64  }
  0x61   : > { %v813_v5 = vld [vmem:[#allocation8] sm:$0xff]  ;;  %v405_v6 = vld [vmem:[%s342_s30] sm:$0xf]  ;;  %s1148_s13 = smov 96   ;;  %v499_v9 = vld [vmem:[%s352_s24] sm:$0xf] }
  0x62   : > { %v500_v10 = vunpack.c.l.bf16 %v499_v9  ;;  %v822_v11 = vld [vmem:[#allocation10 + $0x18] sm:$0xff]  ;;  %v821_v12 = vld [vmem:[#allocation10 + $0x10] sm:$0xff]  ;;  %v820_v13 = vld [vmem:[#allocation10 + $0x8] sm:$0xff]  ;;  %s1149_s3 = smov 32   ;;  %vm509_vm1 = vcmask 261120   ;;  %vm511_vm2 = vcmask 392192  }
  0x63   : > { %558 = vmatpush.bf16.msra.mxu1 %v822_v11  ;;  %v908_v22 = vld [vmem:[%s1423_s4] ss:$0 sm:$0xff]  ;;  %v819_v26 = vld [vmem:[#allocation10] sm:$0xff]  ;;  %vm550_vm3 = vcmask 523264   ;;  %s765_s17 = sshll.u32 %s1348_s28, 3  ;;  %s810_s18 = sshll.u32 %s1214_s8, 3 }
  0x64   : > { %461 = vmatpush.bf16.msra.mxu0 %v817_v1  ;;  %v497_v27 = vld [vmem:[%s332_s23] sm:$0xf]  ;;  %s611_s27 = scalar_lea.hbm %s1426_s7, %s810_s18  ;;  %s403_s23 = scalar_lea.vmem [#allocation11], %s765_s17 }
  0x65   : > { %v498_v28 = vunpack.c.l.bf16 %v497_v27  ;;  %v909_v34 = vld [vmem:[%s1425_s6] ss:$0 sm:$0xff]  ;;  %s613_s9 = sshll.u32 %s403_s23, 4  ;;  %s615_s16 = sshll.u32 %s611_s27, 4  ;;  %s614_s9 = int_to_ptr.vmem [resolvable:$true] %s613_s9  ;;  %s616_s16 = int_to_ptr.hbm [resolvable:$true] %s615_s16 }
  0x66   : > { %s601_s30 = scalar_lea.sflag [#allocation4], %s1348_s28  ;;  %s1078_s8 = sshra.s32 %s616_s16, 4  ;;  %s1079_s8 = int_to_ptr.hbm [resolvable:$true] %s1078_s8 }
  0x67   : > { %559 = vmatpush.bf16.msra.mxu1 %v821_v12  ;;  %s1080_s24 = scalar_lea.hbm %s1079_s8, 8  ;;  %p1085_p4 = scmp.lt.s32.totalorder %s1079_s8, %s1426_s7 }
  0x68   : > { %462 = vmatpush.bf16.msra.mxu0 %v816_v2  ;;  %p1081_p13 = scmp.ne.s32.totalorder %s1079_s8, %s1080_s24 }
  0x6a   : > { %p1082_p9 = pnand %p1081_p13, %p1259_p0 }
  0x6b   : > { %560 = vmatpush.bf16.msra.mxu1 %v820_v13 }
  0x6c   : > { %463 = vmatpush.bf16.msra.mxu0 %v815_v3  ;;  %p1083_p2 = pneg %p1082_p9 }
  0x6f   : > { %561 = vmatpush.bf16.msra.mxu1 %v819_v26 }
  0x70   : > { %464 = vmatpush.bf16.msra.mxu0 %v814_v4 }
  0x74   : > { %465 = vmatpush.bf16.msra.mxu0 %v813_v5 }
  0x77   : > { %790 = vmatmul.msk.bf16.vlgmr.msra.gmra.mxu0 %vm454_vm0, %v405_v6 }
  0xf4   : > { %v467_v7 = vpop.f32.mrf.mxu0 }
  0xf5   : > { %488 = vrot.lane.b32.xlu2 %v467_v7, %s1144_s20  ;;  %480 = vrot.lane.b32.xlu1 %v467_v7, %s1145_s10 }
  0xf6   : > { %472 = vrot.lane.b32.xlu0 %v467_v7, %s1146_s11  ;;  %s1084_s11 = scalar_lea.hbm %s1426_s7, 16 }
  0xf7   : > { %p1086_p1 = scmp.lt.s32.totalorder %s1084_s11, %s1080_s24 }
  0xf9   : > { %p1087_p7 = por %p1086_p1, %p1085_p4 }
  0xfb   : > { %p1088_p10 = pnand %p1087_p7, %p1083_p2 }
  0xfc   : > { %v469_v8 = vpop.f32.mrf.mxu0 }
  0xfd   : > { %484 = vrot.lane.b32.xlu1 %v467_v7, %s1147_s15 }
  0xfe   : > { %476 = vrot.lane.b32.xlu0 %v467_v7, %s1148_s13 }
 0x106   : > { %506 = vrot.lane.b32.xlu0 %v500_v10, %s1144_s20 }
 0x14f   : > { %v489_v23 = vpop.permute.xlu2 %488 }
 0x167   : > { %v481_v15 = vpop.permute.xlu1 %480 }
 0x168   : > { %v473_v14 = vpop.permute.xlu0 %472 }
 0x169   : > { %v475_v16 = vmax.f32 %v467_v7, %v473_v14 }
 0x16f   : > { %v485_v20 = vpop.permute.xlu1 %484 }
 0x170   : > { %v477_v17 = vpop.permute.xlu0 %476 }
 0x171   : > { %v479_v18 = vmax.f32 %v475_v16, %v477_v17 }
 0x173   : > { %v483_v19 = vmax.f32 %v479_v18, %v481_v15 }
 0x175   : > { %v487_v21 = vmax.f32 %v483_v19, %v485_v20 }
 0x177   : > { %v491_v24 = vmax.f32 %v487_v21, %v489_v23 }
 0x178   : > { %v507_v29 = vpop.permute.xlu0 %506 }
 0x179   : > { %v496_v25 = vadd.f32 %v908_v22, %v491_v24 }
 0x17b   : > { %502 = vrot.lane.b32.xlu2 %v496_v25, %s1149_s3 }
 0x1d5   : > { %v503_v30 = vpop.permute.xlu2 %502 }
 0x1d6   : > { %v510_v31 = vsel %vm509_vm1, %v498_v28, %v503_v30 }
 0x1d7   : > { %v512_v32 = vsel %vm511_vm2, %v510_v31, %v507_v29 }
 0x1d8   : > { %v513_v33 = vpack.c.bf16 %v512_v32, %v512_v32 }
 0x1da   : > { %807 = vmatmul.msk.bf16.vlgmr.msra.gmra.mxu1 %vm550_vm3, %v513_v33 }
 0x257   : > { %v563_v35 = vpop.f32.mrf.mxu1 }
 0x258   : > { %v564_v36 = vadd.f32 %v909_v34, %v563_v35 }
 0x25a   : > { %v808_v37 = vmul.f32 -1.442695, %v564_v36  ;;  %v567_v53 = vmax.f32 %v564_v36, 0.0 }
 0x25c   : > { %910 = vpow2.f32 %v808_v37 }
 0x25f   : > { %v565_v38 = vpop.f32.mrf.mxu1 }
 0x262   : > { %v911_v39 = vpop.eup %910 }
 0x263   : > { %v571_v40 = vadd.f32 1.0, %v911_v39 }
 0x265   : > { %912 = vrcp.f32 %v571_v40  ;;  %v583_v44 = vand.u32 2147483648, %v571_v40  ;;  %v581_v46 = vand.u32 2147483647, %v571_v40  ;;  %vm577_vm5 = vweird.f32 %v571_v40 }
 0x267   : > { %v584_v48 = vor.u32 1.1754944e-38, %v583_v44  ;;  %vm582_vm7 = vcmp.eq.f32.partialorder %v581_v46, 8.507059e+37 }
 0x26b   : > { %v913_v41 = vpop.eup %912 }
 0x26c   : > { %v573_v42 = vmul.f32 %v913_v41, %v571_v40  ;;  %vm578_vm4 = vweird.f32 %v913_v41 }
 0x26d   : > { %vm579_vm6 = vmor %vm577_vm5, %vm578_vm4 }
 0x26e   : > { %v574_v43 = vsub.f32 1.0, %v573_v42 }
 0x270   : > { %v575_v45 = vmul.f32 %v913_v41, %v574_v43 }
 0x272   : > { %v576_v47 = vadd.f32 %v913_v41, %v575_v45 }
 0x274   : > { %v580_v49 = vsel %vm579_vm6, %v913_v41, %v576_v47 }
 0x275   : > { %v585_v50 = vsel %vm582_vm7, %v584_v48, %v580_v49 }
 0x276   : > { %588 = vrot.lane.b32.xlu1 %v585_v50, %s1147_s15  ;;  %v592_v51 = vsub.f32 1.0, %v585_v50 }
 0x278   : > { %594 = vrot.lane.b32.xlu2 %v592_v51, %s1147_s15 }
 0x2d2   : > { %v595_v52 = vpop.permute.xlu2 %594 }
 0x2d3   : > { %v597_v55 = vmul.f32 %v595_v52, %v512_v32 }
 0x2e8   : > { %v589_v54 = vpop.permute.xlu1 %588 }
 0x2e9   : > { %v591_v56 = vmul.f32 %v589_v54, %v567_v53 }
 0x2eb   : > { %v598_v57 = vadd.f32 %v597_v55, %v591_v56 }
 0x2ed   : > { %599 = vst.msk [vmem:[%s403_s23] sm:$0xff] %vm550_vm3, %v598_v57 }
 0x2ee   : > { %1091 = shalt.err (!%p1088_p10)
}
 0x2ef   : > { %837 = dma.vmem_to_hbm [thread:$0]  (%p1259_p0), %s614_s9, 128, %s616_s16, %s601_s30  }
 0x2f0 PF: > { %s1456_s28 = sld [smem:[#allocation16_spill]] }
 0x2f1   : > { %s1458_s1 = sld [smem:[#allocation17_spill]] }
 0x2f6   : > { %s627_s3 = sand.u32 1, %s1456_s28  }
 0x2f7   : > { %p1459_p6 = scmp.ge.s32.totalorder %s1458_s1, 2  ;;  %s628_s19 = scalar_lea.sflag [#allocation4], %s627_s3 }
 0x2f9   : > { %p857_p11 = pnand %p1459_p6, %p1265_p5 }
 0x2fb   : > { %p858_p12 = pneg %p857_p11 }
 0x2fd   : > { %1121 = dma.done.wait (%p858_p12), %s628_s19, 128  }
 0x2fe   : > { %1123 = vsyncadd (%p858_p12), %s628_s19, 4294967168  ;;  %s1460_s27 = sld [smem:[#allocation18_spill]]  ;;  %s1462_s24 = smov %s1130_s25 }
 0x2ff   : > { %s1461_s22 = sld [smem:[#allocation19_spill]]  ;;  %s1463_s25 = smov %s1134_s26 }
 0x304   : > { %p24_p3 = scmp.ge.s32.totalorder %s1460_s27, 4  }
 0x305   : > { %s1464_s26 = smov %s1461_s22 }
 0x306   :  { %26 = sbr.rel (!%p24_p3) target bundleno = 11 (0xb), region = 125 }
 0x30b   :  { %634 = vsyncpa [#allocation3], 1 }
 0x30c   :  { %636 = vsyncpa [#allocation3 + $0x1], 1 }
 0x30d   :  { %637 = vsyncpa [#allocation6], 1 }
 0x30e   :  { %639 = vsyncpa [#allocation6 + $0x1], 1 }
 0x30f   :  { %640 = vsyncpa [#allocation9], 1 }
 0x310   :  { %641 = vsyncpa [#allocation4], 1 }
 0x311   :  { %643 = vsyncpa [#allocation4 + $0x1], 1 }

</bundles_post_ra>
